<compile_context>
chip_gen: v6e
topology: v6e:2x2x1
jax: 0.10.0
libtpu: 0.0.40
codegen_flags: <defaults>
</compile_context>

<pallas_src>
import functools

import jax
import jax.numpy as jnp
from jax import lax
from jax.experimental import pallas as pl
from jax.experimental.pallas import tpu as pltpu
import numpy as np

NEG_SLOPE = 0.01  # PyTorch nn.LeakyReLU default


def _leaky(x):
    return jnp.where(x > 0, x, NEG_SLOPE * x)


def _sigmoid(x):
    # Numerically stable: exp argument is always <= 0.
    z = jnp.exp(-jnp.abs(x))
    r = 1.0 / (1.0 + z)
    return jnp.where(x >= 0, r, z * r)


def conv_mlp_kernel(x_ref, w1_ref, b1_ref, w2_ref, b2_ref,
                    w3_ref, b3_ref, w4_ref, b4_ref, w5_ref, b5_ref,
                    out_ref):
    """Whole forward pass for one batch tile, in feature-major layout.

    x_ref:   (49, TB)     raw 7x7 inputs, one column per sample
    w1_ref:  (9*sz, 49)   conv1 weight with the im2col gather folded in
    b1_ref:  (9*sz, 1)    conv1 bias tiled over the 9 spatial taps
    w2_ref:  (sz, 9*sz)   conv2 weight stacked over (tap, in-channel)
    w3/w4:   (sz, sz)     linear weights in PyTorch (out, in) form
    w5_ref:  (8, sz)      final linear weight in row 0, rows 1..7 zero
    biases:  (sz, 1) / (1, 1), kept f32
    out_ref: (1, TB)      lane-dense sigmoid output row
    """
    dot_dt = w1_ref.dtype  # bf16 (fast path) or f32 (exact path)

    x = x_ref[...].astype(dot_dt)
    # conv1 at all 9 output taps + LeakyReLU, as a single matmul.
    a1 = _leaky(jnp.dot(w1_ref[...], x,
                        preferred_element_type=jnp.float32) + b1_ref[...])
    # conv2 (1x1 spatial output) + LeakyReLU: contraction over (tap, in-ch).
    h = _leaky(jnp.dot(w2_ref[...], a1.astype(dot_dt),
                       preferred_element_type=jnp.float32) + b2_ref[...])
    # flatten(B, sz, 1, 1) == (sz, B) here; Dropout(p=0.0) is the identity.
    h = _leaky(jnp.dot(w3_ref[...], h.astype(dot_dt),
                       preferred_element_type=jnp.float32) + b3_ref[...])
    h = _leaky(jnp.dot(w4_ref[...], h.astype(dot_dt),
                       preferred_element_type=jnp.float32) + b4_ref[...])
    # sz -> 1 head: padded-to-8-rows matmul, keep row 0, lane-dense (1, TB).
    y8 = jnp.dot(w5_ref[...], h.astype(dot_dt),
                 preferred_element_type=jnp.float32)
    y = y8[0:1, :] + b5_ref[...]
    out_ref[...] = _sigmoid(y).astype(out_ref.dtype)


def _round_up(n, m):
    return ((n + m - 1) // m) * m


def _im2col_selection():
    """0/1 matrix folding the 7x7 -> (9 taps x 25) gather into conv1.

    Returns S of shape (49, 9, 25) with S[j, p, k] = 1 iff flat input pixel j
    feeds element k of the 5x5 patch at conv1 output tap p (p = oy*3 + ox).
    """
    s = np.zeros((49, 9, 25), np.float32)
    for p in range(9):
        oy, ox = divmod(p, 3)
        for ky in range(5):
            for kx in range(5):
                s[(oy + ky) * 7 + (ox + kx), p, ky * 5 + kx] = 1.0
    return s


def pack_params(params, dot_dtype=jnp.bfloat16):
    """Pre-fuse PyTorch-shaped weights into feature-major kernel form.

    Call ONCE at parameter-load time (hoisted out of the per-call jit).
    """
    sz = params["conv1_w"].shape[0]
    w1_flat = params["conv1_w"].reshape(sz, 25).T                    # (25, sz)
    s3 = jnp.asarray(_im2col_selection())                            # (49,9,25)
    w1_eff = jnp.einsum("jpk,kc->jpc", s3, w1_flat).reshape(49, 9 * sz)
    w1_t = w1_eff.T.astype(dot_dtype)                                # (9sz,49)
    b1 = jnp.tile(params["conv1_b"], 9).reshape(9 * sz, 1).astype(jnp.float32)
    w2_t = (params["conv2_w"].transpose(0, 2, 3, 1)
            .reshape(sz, 9 * sz).astype(dot_dtype))                  # (sz,9sz)
    b2 = params["conv2_b"].reshape(sz, 1).astype(jnp.float32)
    w3 = params["lin1_w"].astype(dot_dtype)                          # (sz, sz)
    b3 = params["lin1_b"].reshape(sz, 1).astype(jnp.float32)
    w4 = params["lin2_w"].astype(dot_dtype)                          # (sz, sz)
    b4 = params["lin2_b"].reshape(sz, 1).astype(jnp.float32)
    w5 = jnp.zeros((8, sz), dot_dtype).at[0].set(
        params["lin3_w"][0].astype(dot_dtype))                       # (8, sz)
    b5 = params["lin3_b"].reshape(1, 1).astype(jnp.float32)
    return (w1_t, b1, w2_t, b2, w3, b3, w4, b4, w5, b5)


@functools.partial(jax.jit, static_argnames=("tb",))
def forward_pallas(x, packed, tb=1024):
    """x: (B, 1, 7, 7) -> (B, 1) float32.  `packed` from pack_params()."""
    B = x.shape[0]

    # Batch tile: multiple of 128 lanes; default 1024 (512-1024 is already
    # enough on v5e, and per-step overhead is amortized on v6e/v7x).  Cap so
    # the grid keeps >= 2 tiles whenever the batch allows it, so the
    # "parallel" axis can shard across both v7x TensorCores.
    tb = max(128, (int(tb) // 128) * 128)
    B128 = _round_up(B, 128)
    cap = max(128, _round_up(-(-B128 // 2), 128))
    TB = min(tb, cap)
    B_pad = _round_up(B, TB)
    n_tiles = B_pad // TB

    # Feature-major input: one sample per lane => lane-dense blocks & output.
    x_t = x.reshape(B, 49).astype(jnp.float32).T                     # (49, B)
    if B_pad != B:
        x_t = jnp.pad(x_t, ((0, 0), (0, B_pad - B)))

    def full(a):  # whole-array block, VMEM-resident across all grid steps
        return pl.BlockSpec(a.shape, lambda i: (0, 0))

    out = pl.pallas_call(
        conv_mlp_kernel,
        out_shape=jax.ShapeDtypeStruct((n_tiles, 1, TB), jnp.float32),
        grid=(n_tiles,),
        in_specs=[pl.BlockSpec((49, TB), lambda i: (0, i))]
                 + [full(w) for w in packed],
        out_specs=pl.BlockSpec((None, 1, TB), lambda i: (i, 0, 0)),
        compiler_params=pltpu.CompilerParams(
            dimension_semantics=("parallel",)),
        # Per-tile VMEM is ~2 MiB at TB=1024; no vmem_limit_bytes override
        # needed.  Only very large tiles (>=8K rows) would need one on v7x.
    )(x_t, *packed)

    return out.reshape(B_pad, 1)[:B]


def init_params(sz, key):
    """Deterministic PyTorch-shaped parameters (uniform +-1/sqrt(fan_in))."""
    ks = jax.random.split(key, 10)

    def u(k, shape, fan_in):
        b = 1.0 / np.sqrt(fan_in)
        return jax.random.uniform(k, shape, jnp.float32, -b, b)

    return {
        "conv1_w": u(ks[0], (sz, 1, 5, 5), 1 * 5 * 5),
        "conv1_b": u(ks[1], (sz,), 1 * 5 * 5),
        "conv2_w": u(ks[2], (sz, sz, 3, 3), sz * 3 * 3),
        "conv2_b": u(ks[3], (sz,), sz * 3 * 3),
        "lin1_w": u(ks[4], (sz, sz), sz),
        "lin1_b": u(ks[5], (sz,), sz),
        "lin2_w": u(ks[6], (sz, sz), sz),
        "lin2_b": u(ks[7], (sz,), sz),
        "lin3_w": u(ks[8], (1, sz), sz),
        "lin3_b": u(ks[9], (1,), sz),
    }


def forward_reference(x, params):
    """Pure-JAX reference matching the PyTorch forward."""
    B = x.shape[0]
    dn = ("NCHW", "OIHW", "NCHW")
    y = lax.conv_general_dilated(x, params["conv1_w"], (1, 1), "VALID",
                                 dimension_numbers=dn)
    y = _leaky(y + params["conv1_b"][None, :, None, None])
    y = lax.conv_general_dilated(y, params["conv2_w"], (1, 1), "VALID",
                                 dimension_numbers=dn)
    y = _leaky(y + params["conv2_b"][None, :, None, None])
    y = y.reshape(B, -1)
    y = _leaky(y @ params["lin1_w"].T + params["lin1_b"])
    y = _leaky(y @ params["lin2_w"].T + params["lin2_b"])
    y = jax.nn.sigmoid(y @ params["lin3_w"].T + params["lin3_b"])
    return y


if __name__ == "__main__":
    SZ = 32
    key = jax.random.PRNGKey(0)
    kx, kp = jax.random.split(key)
    params = init_params(SZ, kp)

    # Packing happens once, outside the per-call jit (review item).
    packed_f32 = pack_params(params, dot_dtype=jnp.float32)    # exact path
    packed_bf16 = pack_params(params, dot_dtype=jnp.bfloat16)  # fast path

    # Small ragged batch (single padded tile) and a multi-tile batch.
    for B in (2, 300):
        xb = jax.random.normal(jax.random.fold_in(kx, B), (B, 1, 7, 7),
                               dtype=jnp.float32)
        ref = jax.block_until_ready(forward_reference(xb, params))

        out32 = jax.block_until_ready(forward_pallas(xb, packed_f32))
        assert out32.shape == (B, 1)
        np.testing.assert_allclose(np.asarray(out32), np.asarray(ref),
                                   rtol=1e-4, atol=1e-4)

        out16 = jax.block_until_ready(forward_pallas(xb, packed_bf16))
        assert out16.shape == (B, 1)
        np.testing.assert_allclose(np.asarray(out16), np.asarray(ref),
                                   rtol=3e-2, atol=3e-2)

    print("KERNEL_OK")
</pallas_src>

<mosaic_0001>
module attributes {stable_mosaic.version = 11 : i64} {
  func.func @conv_mlp_kernel(%arg0: i32, %arg1: memref<49x128xf32, #tpu.memory_space<vmem>>, %arg2: memref<288x49xf32, #tpu.memory_space<vmem>>, %arg3: memref<288x1xf32, #tpu.memory_space<vmem>>, %arg4: memref<32x288xf32, #tpu.memory_space<vmem>>, %arg5: memref<32x1xf32, #tpu.memory_space<vmem>>, %arg6: memref<32x32xf32, #tpu.memory_space<vmem>>, %arg7: memref<32x1xf32, #tpu.memory_space<vmem>>, %arg8: memref<32x32xf32, #tpu.memory_space<vmem>>, %arg9: memref<32x1xf32, #tpu.memory_space<vmem>>, %arg10: memref<8x32xf32, #tpu.memory_space<vmem>>, %arg11: memref<1x1xf32, #tpu.memory_space<vmem>>, %arg12: memref<1x1x128xf32, #tpu.memory_space<vmem>>) attributes {dimension_semantics = [#tpu.dimension_semantics<parallel>], iteration_bounds = array<i64: 1>, scalar_prefetch = 0 : i64, scratch_operands = 0 : i64, tpu.core_type = #tpu.core_type<tc>, window_params = [{transform_indices = @transform_0, window_bounds = array<i64: 49, 128>}, {pipeline_mode = #tpu.pipeline_mode<synchronous>, transform_indices = @transform_1, window_bounds = array<i64: 288, 49>}, {pipeline_mode = #tpu.pipeline_mode<synchronous>, transform_indices = @transform_2, window_bounds = array<i64: 288, 1>}, {pipeline_mode = #tpu.pipeline_mode<synchronous>, transform_indices = @transform_3, window_bounds = array<i64: 32, 288>}, {pipeline_mode = #tpu.pipeline_mode<synchronous>, transform_indices = @transform_4, window_bounds = array<i64: 32, 1>}, {pipeline_mode = #tpu.pipeline_mode<synchronous>, transform_indices = @transform_5, window_bounds = array<i64: 32, 32>}, {pipeline_mode = #tpu.pipeline_mode<synchronous>, transform_indices = @transform_6, window_bounds = array<i64: 32, 1>}, {pipeline_mode = #tpu.pipeline_mode<synchronous>, transform_indices = @transform_7, window_bounds = array<i64: 32, 32>}, {pipeline_mode = #tpu.pipeline_mode<synchronous>, transform_indices = @transform_8, window_bounds = array<i64: 32, 1>}, {pipeline_mode = #tpu.pipeline_mode<synchronous>, transform_indices = @transform_9, window_bounds = array<i64: 8, 32>}, {pipeline_mode = #tpu.pipeline_mode<synchronous>, transform_indices = @transform_10, window_bounds = array<i64: 1, 1>}, {transform_indices = @transform_11, window_bounds = array<i64: 1, 1, 128>}]} {
    %c0 = arith.constant 0 : index
    %c0_0 = arith.constant 0 : index
    %0 = vector.load %arg1[%c0, %c0_0] : memref<49x128xf32, #tpu.memory_space<vmem>>, vector<49x128xf32>
    %c0_1 = arith.constant 0 : index
    %c0_2 = arith.constant 0 : index
    %1 = vector.load %arg2[%c0_1, %c0_2] : memref<288x49xf32, #tpu.memory_space<vmem>>, vector<288x49xf32>
    %cst = arith.constant dense<0.000000e+00> : vector<288x128xf32>
    %2 = tpu.matmul %1, %0, %cst {dimension_numbers = #tpu.dot_dimension_numbers<[1], [0], [0], [1], [0, 0, 1, 1], [], []>} : vector<288x49xf32>, vector<49x128xf32>, vector<288x128xf32> -> vector<288x128xf32>
    %c0_3 = arith.constant 0 : index
    %c0_4 = arith.constant 0 : index
    %3 = vector.load %arg3[%c0_3, %c0_4] : memref<288x1xf32, #tpu.memory_space<vmem>>, vector<288x1xf32>
    %4 = vector.broadcast %3 : vector<288x1xf32> to vector<288x128xf32>
    %5 = arith.addf %2, %4 : vector<288x128xf32>
    %cst_5 = arith.constant 0.000000e+00 : f32
    %6 = vector.broadcast %cst_5 : f32 to vector<288x128xf32>
    %7 = arith.cmpf ogt, %5, %6 : vector<288x128xf32>
    %cst_6 = arith.constant 0.00999999977 : f32
    %8 = vector.broadcast %cst_6 : f32 to vector<288x128xf32>
    %9 = arith.mulf %8, %5 : vector<288x128xf32>
    %10 = arith.select %7, %5, %9 : vector<288x128xi1>, vector<288x128xf32>
    %c0_7 = arith.constant 0 : index
    %c0_8 = arith.constant 0 : index
    %11 = vector.load %arg4[%c0_7, %c0_8] : memref<32x288xf32, #tpu.memory_space<vmem>>, vector<32x288xf32>
    %cst_9 = arith.constant dense<0.000000e+00> : vector<32x128xf32>
    %12 = tpu.matmul %11, %10, %cst_9 {dimension_numbers = #tpu.dot_dimension_numbers<[1], [0], [0], [1], [0, 0, 1, 1], [], []>} : vector<32x288xf32>, vector<288x128xf32>, vector<32x128xf32> -> vector<32x128xf32>
    %c0_10 = arith.constant 0 : index
    %c0_11 = arith.constant 0 : index
    %13 = vector.load %arg5[%c0_10, %c0_11] : memref<32x1xf32, #tpu.memory_space<vmem>>, vector<32x1xf32>
    %14 = vector.broadcast %13 : vector<32x1xf32> to vector<32x128xf32>
    %15 = arith.addf %12, %14 : vector<32x128xf32>
    %cst_12 = arith.constant 0.000000e+00 : f32
    %16 = vector.broadcast %cst_12 : f32 to vector<32x128xf32>
    %17 = arith.cmpf ogt, %15, %16 : vector<32x128xf32>
    %cst_13 = arith.constant 0.00999999977 : f32
    %18 = vector.broadcast %cst_13 : f32 to vector<32x128xf32>
    %19 = arith.mulf %18, %15 : vector<32x128xf32>
    %20 = arith.select %17, %15, %19 : vector<32x128xi1>, vector<32x128xf32>
    %c0_14 = arith.constant 0 : index
    %c0_15 = arith.constant 0 : index
    %21 = vector.load %arg6[%c0_14, %c0_15] : memref<32x32xf32, #tpu.memory_space<vmem>>, vector<32x32xf32>
    %cst_16 = arith.constant dense<0.000000e+00> : vector<32x128xf32>
    %22 = tpu.matmul %21, %20, %cst_16 {dimension_numbers = #tpu.dot_dimension_numbers<[1], [0], [0], [1], [0, 0, 1, 1], [], []>} : vector<32x32xf32>, vector<32x128xf32>, vector<32x128xf32> -> vector<32x128xf32>
    %c0_17 = arith.constant 0 : index
    %c0_18 = arith.constant 0 : index
    %23 = vector.load %arg7[%c0_17, %c0_18] : memref<32x1xf32, #tpu.memory_space<vmem>>, vector<32x1xf32>
    %24 = vector.broadcast %23 : vector<32x1xf32> to vector<32x128xf32>
    %25 = arith.addf %22, %24 : vector<32x128xf32>
    %cst_19 = arith.constant 0.000000e+00 : f32
    %26 = vector.broadcast %cst_19 : f32 to vector<32x128xf32>
    %27 = arith.cmpf ogt, %25, %26 : vector<32x128xf32>
    %cst_20 = arith.constant 0.00999999977 : f32
    %28 = vector.broadcast %cst_20 : f32 to vector<32x128xf32>
    %29 = arith.mulf %28, %25 : vector<32x128xf32>
    %30 = arith.select %27, %25, %29 : vector<32x128xi1>, vector<32x128xf32>
    %c0_21 = arith.constant 0 : index
    %c0_22 = arith.constant 0 : index
    %31 = vector.load %arg8[%c0_21, %c0_22] : memref<32x32xf32, #tpu.memory_space<vmem>>, vector<32x32xf32>
    %cst_23 = arith.constant dense<0.000000e+00> : vector<32x128xf32>
    %32 = tpu.matmul %31, %30, %cst_23 {dimension_numbers = #tpu.dot_dimension_numbers<[1], [0], [0], [1], [0, 0, 1, 1], [], []>} : vector<32x32xf32>, vector<32x128xf32>, vector<32x128xf32> -> vector<32x128xf32>
    %c0_24 = arith.constant 0 : index
    %c0_25 = arith.constant 0 : index
    %33 = vector.load %arg9[%c0_24, %c0_25] : memref<32x1xf32, #tpu.memory_space<vmem>>, vector<32x1xf32>
    %34 = vector.broadcast %33 : vector<32x1xf32> to vector<32x128xf32>
    %35 = arith.addf %32, %34 : vector<32x128xf32>
    %cst_26 = arith.constant 0.000000e+00 : f32
    %36 = vector.broadcast %cst_26 : f32 to vector<32x128xf32>
    %37 = arith.cmpf ogt, %35, %36 : vector<32x128xf32>
    %cst_27 = arith.constant 0.00999999977 : f32
    %38 = vector.broadcast %cst_27 : f32 to vector<32x128xf32>
    %39 = arith.mulf %38, %35 : vector<32x128xf32>
    %40 = arith.select %37, %35, %39 : vector<32x128xi1>, vector<32x128xf32>
    %c0_28 = arith.constant 0 : index
    %c0_29 = arith.constant 0 : index
    %41 = vector.load %arg10[%c0_28, %c0_29] : memref<8x32xf32, #tpu.memory_space<vmem>>, vector<8x32xf32>
    %cst_30 = arith.constant dense<0.000000e+00> : vector<8x128xf32>
    %42 = tpu.matmul %41, %40, %cst_30 {dimension_numbers = #tpu.dot_dimension_numbers<[1], [0], [0], [1], [0, 0, 1, 1], [], []>} : vector<8x32xf32>, vector<32x128xf32>, vector<8x128xf32> -> vector<8x128xf32>
    %43 = vector.extract_strided_slice %42 {offsets = [0, 0], sizes = [1, 128], strides = [1, 1]} : vector<8x128xf32> to vector<1x128xf32>
    %c0_31 = arith.constant 0 : index
    %c0_32 = arith.constant 0 : index
    %44 = vector.load %arg11[%c0_31, %c0_32] : memref<1x1xf32, #tpu.memory_space<vmem>>, vector<1x1xf32>
    %45 = vector.broadcast %44 : vector<1x1xf32> to vector<1x128xf32>
    %46 = arith.addf %43, %45 : vector<1x128xf32>
    %47 = math.absf %46 : vector<1x128xf32>
    %cst_33 = arith.constant 0.000000e+00 : f32
    %48 = vector.broadcast %cst_33 : f32 to vector<1x128xf32>
    %49 = arith.subf %48, %47 : vector<1x128xf32>
    %50 = math.exp %49 : vector<1x128xf32>
    %cst_34 = arith.constant 1.000000e+00 : f32
    %51 = vector.broadcast %cst_34 : f32 to vector<1x128xf32>
    %52 = arith.addf %51, %50 : vector<1x128xf32>
    %cst_35 = arith.constant 1.000000e+00 : f32
    %53 = vector.broadcast %cst_35 : f32 to vector<1x128xf32>
    %54 = arith.divf %53, %52 : vector<1x128xf32>
    %cst_36 = arith.constant 0.000000e+00 : f32
    %55 = vector.broadcast %cst_36 : f32 to vector<1x128xf32>
    %56 = arith.cmpf oge, %46, %55 : vector<1x128xf32>
    %57 = arith.mulf %50, %54 : vector<1x128xf32>
    %58 = arith.select %56, %54, %57 : vector<1x128xi1>, vector<1x128xf32>
    %c0_37 = arith.constant 0 : index
    %c0_38 = arith.constant 0 : index
    %c0_39 = arith.constant 0 : index
    %59 = vector.load %arg12[%c0_37, %c0_38, %c0_39] : memref<1x1x128xf32, #tpu.memory_space<vmem>>, vector<1x1x128xf32>
    %60 = vector.shape_cast %59 : vector<1x1x128xf32> to vector<1x128xf32>
    %61 = vector.shape_cast %58 : vector<1x128xf32> to vector<1x1x128xf32>
    tpu.vector_store %arg12[%c0_37, %c0_38, %c0_39], %61 {strides = array<i32>} : memref<1x1x128xf32, #tpu.memory_space<vmem>>, vector<1x1x128xf32>,
    return
  }
  func.func @transform_0(%arg0: i32) -> (i32, i32) {
    %c0_i32 = arith.constant 0 : i32
    %c0_i32_0 = arith.constant 0 : i32
    return %c0_i32, %arg0 : i32, i32
  }
  func.func @transform_1(%arg0: i32) -> (i32, i32) {
    %c0_i32 = arith.constant 0 : i32
    %c0_i32_0 = arith.constant 0 : i32
    %c0_i32_1 = arith.constant 0 : i32
    return %c0_i32, %c0_i32_0 : i32, i32
  }
  func.func @transform_2(%arg0: i32) -> (i32, i32) {
    %c0_i32 = arith.constant 0 : i32
    %c0_i32_0 = arith.constant 0 : i32
    %c0_i32_1 = arith.constant 0 : i32
    return %c0_i32, %c0_i32_0 : i32, i32
  }
  func.func @transform_3(%arg0: i32) -> (i32, i32) {
    %c0_i32 = arith.constant 0 : i32
    %c0_i32_0 = arith.constant 0 : i32
    %c0_i32_1 = arith.constant 0 : i32
    return %c0_i32, %c0_i32_0 : i32, i32
  }
  func.func @transform_4(%arg0: i32) -> (i32, i32) {
    %c0_i32 = arith.constant 0 : i32
    %c0_i32_0 = arith.constant 0 : i32
    %c0_i32_1 = arith.constant 0 : i32
    return %c0_i32, %c0_i32_0 : i32, i32
  }
  func.func @transform_5(%arg0: i32) -> (i32, i32) {
    %c0_i32 = arith.constant 0 : i32
    %c0_i32_0 = arith.constant 0 : i32
    %c0_i32_1 = arith.constant 0 : i32
    return %c0_i32, %c0_i32_0 : i32, i32
  }
  func.func @transform_6(%arg0: i32) -> (i32, i32) {
    %c0_i32 = arith.constant 0 : i32
    %c0_i32_0 = arith.constant 0 : i32
    %c0_i32_1 = arith.constant 0 : i32
    return %c0_i32, %c0_i32_0 : i32, i32
  }
  func.func @transform_7(%arg0: i32) -> (i32, i32) {
    %c0_i32 = arith.constant 0 : i32
    %c0_i32_0 = arith.constant 0 : i32
    %c0_i32_1 = arith.constant 0 : i32
    return %c0_i32, %c0_i32_0 : i32, i32
  }
  func.func @transform_8(%arg0: i32) -> (i32, i32) {
    %c0_i32 = arith.constant 0 : i32
    %c0_i32_0 = arith.constant 0 : i32
    %c0_i32_1 = arith.constant 0 : i32
    return %c0_i32, %c0_i32_0 : i32, i32
  }
  func.func @transform_9(%arg0: i32) -> (i32, i32) {
    %c0_i32 = arith.constant 0 : i32
    %c0_i32_0 = arith.constant 0 : i32
    %c0_i32_1 = arith.constant 0 : i32
    return %c0_i32, %c0_i32_0 : i32, i32
  }
  func.func @transform_10(%arg0: i32) -> (i32, i32) {
    %c0_i32 = arith.constant 0 : i32
    %c0_i32_0 = arith.constant 0 : i32
    %c0_i32_1 = arith.constant 0 : i32
    return %c0_i32, %c0_i32_0 : i32, i32
  }
  func.func @transform_11(%arg0: i32) -> (i32, i32, i32) {
    %c0_i32 = arith.constant 0 : i32
    %c0_i32_0 = arith.constant 0 : i32
    %c0_i32_1 = arith.constant 0 : i32
    return %arg0, %c0_i32, %c0_i32_0 : i32, i32, i32
  }
}

</mosaic_0001>

<bundles_post_ra>
// kernel: forward_pallas.1
= control target key start
LH: loop header
LB: loop body
LE: loop exit
PB: predicated region body
PF: predicated region fallthrough
CT: control target
= control target key end

     0   :  { %vm408_vm0 = vcmask 1040384   ;;  %vm299_vm1 = vcmask 400384   ;;  %v1666_v2 = vmov 0   ;;  %s2250_s0 = inlined_call_operand.vmem [shape: f32[49,128], index: 0, kind: input, shape index: {}]   ;;  %s2251_s1 = inlined_call_operand.vmem [shape: f32[288,49], index: 1, kind: input, shape index: {}]   ;;  %s2252_s10 = inlined_call_operand.<no memory space> [shape: f32[1,1], index: 10, kind: input, shape index: {}]   ;;  %s2253_s2 = inlined_call_operand.vmem [shape: f32[288,1], index: 2, kind: input, shape index: {}]   ;;  %s2254_s4 = inlined_call_operand.vmem [shape: f32[32,1], index: 4, kind: input, shape index: {}]   ;;  %s2255_s6 = inlined_call_operand.vmem [shape: f32[32,1], index: 6, kind: input, shape index: {}]   ;;  %s2256_s8 = inlined_call_operand.vmem [shape: f32[32,1], index: 8, kind: input, shape index: {}]   ;;  %s2257_s3 = inlined_call_operand.vmem [shape: f32[32,288], index: 3, kind: input, shape index: {}]   ;;  %s2258_s5 = inlined_call_operand.vmem [shape: f32[32,32], index: 5, kind: input, shape index: {}]   ;;  %s2259_s7 = inlined_call_operand.vmem [shape: f32[32,32], index: 7, kind: input, shape index: {}]   ;;  %s2260_s9 = inlined_call_operand.vmem [shape: f32[8,32], index: 9, kind: input, shape index: {}]   ;;  %s2261_s11 = inlined_call_operand.vmem [shape: f32[1,1,128], index: 11, kind: output, shape index: {}]  }
   0x1   :  { %v46_v0 = vld [vmem:[%s2250_s0 + $0x30] sm:$0x1]  ;;  %v45_v1 = vld [vmem:[%s2250_s0 + $0x28] sm:$0xff]  ;;  %1660 = vset.pattern.permute.xlu0 %v1666_v2  ;;  %1661 = vset.pattern.permute.xlu1 %v1666_v2  ;;  %v16_v3 = vstv %s2252_s10  ;;  %v44_v4 = vld [vmem:[%s2250_s0 + $0x20] sm:$0xff] }
   0x2   :  { %1536 = vmatprep.subr.msk.mxu0 %vm408_vm0, %v46_v0  ;;  %17 = vst [vmem:[#allocation2] sm:$0x1] %v16_v3  ;;  %v47_v5 = vld [vmem:[%s2251_s1] sm:$0xff]  ;;  %v114_v6 = vld [vmem:[%s2253_s2 + $0xf8] sm:$0xff]  ;;  %v113_v8 = vld [vmem:[%s2253_s2 + $0xf0] sm:$0xff] }
   0x3   :  { %1537 = vmatpush3.msk.msra.mxu0 %vm408_vm0, %v46_v0  ;;  %1550 = vmatprep.mubr.msk.f32.mxu0 %vm299_vm1, %v47_v5  ;;  %v43_v7 = vld [vmem:[%s2250_s0 + $0x18] sm:$0xff]  ;;  %v42_v10 = vld [vmem:[%s2250_s0 + $0x10] sm:$0xff]  ;;  %v41_v12 = vld [vmem:[%s2250_s0 + $0x8] sm:$0xff] }
   0x4   :  { %1538 = vmatprep.subr.mxu0 %v45_v1  ;;  %276 = vperm.xlu0 %1660, %v114_v6   ;;  %v98_v9 = vld [vmem:[%s2253_s2 + $0x78] sm:$0xff]  ;;  %v97_v11 = vld [vmem:[%s2253_s2 + $0x70] sm:$0xff]  ;;  %v112_v13 = vld [vmem:[%s2253_s2 + $0xe8] sm:$0xff] }
   0x5   :  { %1539 = vmatpush3.msra.mxu0 %v45_v1  ;;  %271 = vperm.xlu1 %1661, %v113_v8   ;;  %v40_v14 = vld [vmem:[%s2250_s0] sm:$0xff]  ;;  %v96_v15 = vld [vmem:[%s2253_s2 + $0x68] sm:$0xff]  ;;  %v49_v17 = vld [vmem:[%s2251_s1 + $0x10] sm:$0xff] }
   0x6   :  { %1540 = vmatprep.subr.mxu0 %v44_v4  ;;  %v48_v16 = vld [vmem:[%s2251_s1 + $0x8] sm:$0xff]  ;;  %v111_v18 = vld [vmem:[%s2253_s2 + $0xe0] sm:$0xff]  ;;  %v50_v20 = vld [vmem:[%s2251_s1 + $0x18] sm:$0xff] }
   0x7   :  { %1541 = vmatpush3.msra.mxu0 %v44_v4  ;;  %v95_v19 = vld [vmem:[%s2253_s2 + $0x60] sm:$0xff]  ;;  %v110_v22 = vld [vmem:[%s2253_s2 + $0xd8] sm:$0xff]  ;;  %v52_v24 = vld [vmem:[%s2251_s1 + $0x28] sm:$0xff] }
   0x8   :  { %1542 = vmatprep.subr.mxu0 %v43_v7  ;;  %196 = vperm.xlu0 %1660, %v98_v9   ;;  %v51_v21 = vld [vmem:[%s2251_s1 + $0x20] sm:$0xff]  ;;  %v94_v23 = vld [vmem:[%s2253_s2 + $0x58] sm:$0xff]  ;;  %v53_v25 = vld [vmem:[%s2251_s1 + $0x30] sm:$0xff] }
   0x9   :  { %1543 = vmatpush3.msra.mxu0 %v43_v7  ;;  %191 = vperm.xlu1 %1661, %v97_v11   ;;  %v109_v26 = vld [vmem:[%s2253_s2 + $0xd0] sm:$0xff]  ;;  %v54_v28 = vld [vmem:[%s2251_s1 + $0x38] sm:$0xff]  ;;  %v55_v29 = vld [vmem:[%s2251_s1 + $0x40] sm:$0xff] }
   0xa   :  { %1544 = vmatprep.subr.mxu0 %v42_v10  ;;  %v93_v27 = vld [vmem:[%s2253_s2 + $0x50] sm:$0xff]  ;;  %v108_v30 = vld [vmem:[%s2253_s2 + $0xc8] sm:$0xff]  ;;  %v107_v34 = vld [vmem:[%s2253_s2 + $0xc0] sm:$0xff] }
   0xb   :  { %1545 = vmatpush3.msra.mxu0 %v42_v10  ;;  %v92_v31 = vld [vmem:[%s2253_s2 + $0x48] sm:$0xff]  ;;  %v57_v33 = vld [vmem:[%s2251_s1 + $0x50] sm:$0xff]  ;;  %v91_v35 = vld [vmem:[%s2253_s2 + $0x40] sm:$0xff] }
   0xc   :  { %1546 = vmatprep.subr.mxu0 %v41_v12  ;;  %266 = vperm.xlu0 %1660, %v112_v13   ;;  %v56_v32 = vld [vmem:[%s2251_s1 + $0x48] sm:$0xff]  ;;  %v58_v36 = vld [vmem:[%s2251_s1 + $0x58] sm:$0xff]  ;;  %v59_v37 = vld [vmem:[%s2251_s1 + $0x60] sm:$0xff] }
   0xd   :  { %1547 = vmatpush3.msra.mxu0 %v41_v12  ;;  %186 = vperm.xlu1 %1661, %v96_v15   ;;  %v106_v38 = vld [vmem:[%s2253_s2 + $0xb8] sm:$0xff]  ;;  %v60_v40 = vld [vmem:[%s2251_s1 + $0x68] sm:$0xff]  ;;  %v61_v41 = vld [vmem:[%s2251_s1 + $0x70] sm:$0xff] }
   0xe   :  { %1548 = vmatprep.subr.mxu0 %v40_v14  ;;  %v90_v39 = vld [vmem:[%s2253_s2 + $0x38] sm:$0xff]  ;;  %v105_v42 = vld [vmem:[%s2253_s2 + $0xb0] sm:$0xff]  ;;  %v63_v45 = vld [vmem:[%s2251_s1 + $0x80] sm:$0xff] }
   0xf   :  { %1549 = vmatpush3.msra.mxu0 %v40_v14  ;;  %v89_v43 = vld [vmem:[%s2253_s2 + $0x30] sm:$0xff]  ;;  %v62_v44 = vld [vmem:[%s2251_s1 + $0x78] sm:$0xff]  ;;  %v104_v46 = vld [vmem:[%s2253_s2 + $0xa8] sm:$0xff] }
  0x10   :  { %1551 = vmatmul.mubr.msk.f32.vlgmr.msra.gmra.mxu0 %vm299_vm1, %v48_v16  ;;  %261 = vperm.xlu0 %1660, %v111_v18   ;;  %v88_v47 = vld [vmem:[%s2253_s2 + $0x28] sm:$0xff]  ;;  %v65_v49 = vld [vmem:[%s2251_s1 + $0x90] sm:$0xff]  ;;  %v103_v50 = vld [vmem:[%s2253_s2 + $0xa0] sm:$0xff] }
  0x11   :  { %1553 = vmatprep.mubr.msk.f32.mxu0 %vm299_vm1, %v49_v17  ;;  %181 = vperm.xlu1 %1661, %v95_v19   ;;  %v64_v48 = vld [vmem:[%s2251_s1 + $0x88] sm:$0xff]  ;;  %v87_v51 = vld [vmem:[%s2253_s2 + $0x20] sm:$0xff]  ;;  %v66_v52 = vld [vmem:[%s2251_s1 + $0x98] sm:$0xff] }
  0x12   :  { %v67_v53 = vld [vmem:[%s2251_s1 + $0xa0] sm:$0xff]  ;;  %v102_v54 = vld [vmem:[%s2253_s2 + $0x98] sm:$0xff]  ;;  %v68_v56 = vld [vmem:[%s2251_s1 + $0xa8] sm:$0xff] }
  0x13   :  { %v86_v55 = vld [vmem:[%s2253_s2 + $0x18] sm:$0xff]  ;;  %v69_v57 = vld [vmem:[%s2251_s1 + $0xb0] sm:$0xff]  ;;  %v71_v61 = vld [vmem:[%s2251_s1 + $0xc0] sm:$0xff] }
  0x14   :  { %1554 = vmatmul.mubr.msk.f32.gmra.mxu0 %vm299_vm1, %v50_v20  ;;  %256 = vperm.xlu0 %1660, %v110_v22   ;;  %v101_v58 = vld [vmem:[%s2253_s2 + $0x90] sm:$0xff]  ;;  %v70_v60 = vld [vmem:[%s2251_s1 + $0xb8] sm:$0xff]  ;;  %v100_v62 = vld [vmem:[%s2253_s2 + $0x88] sm:$0xff] }
  0x15   :  { %1556 = vmatprep.mubr.msk.f32.mxu0 %vm299_vm1, %v51_v21  ;;  %176 = vperm.xlu1 %1661, %v94_v23   ;;  %v85_v59 = vld [vmem:[%s2253_s2 + $0x10] sm:$0xff]  ;;  %v84_v63 = vld [vmem:[%s2253_s2 + $0x8] sm:$0xff]  ;;  %v99_v2 = vld [vmem:[%s2253_s2 + $0x80] sm:$0xff] }
  0x16   :  { %v72_v0 = vld [vmem:[%s2251_s1 + $0xc8] sm:$0xff]  ;;  %v73_v1 = vld [vmem:[%s2251_s1 + $0xd0] sm:$0xff]  ;;  %v83_v3 = vld [vmem:[%s2253_s2] sm:$0xff] }
  0x17   :  { %v74_v4 = vld [vmem:[%s2251_s1 + $0xd8] sm:$0xff]  ;;  %v75_v5 = vld [vmem:[%s2251_s1 + $0xe0] sm:$0xff]  ;;  %v117_v7 = vld [vmem:[%s2253_s2 + $0x110] sm:$0xff] }
  0x18   :  { %1557 = vmatmul.mubr.msk.f32.gmra.mxu0 %vm299_vm1, %v52_v24  ;;  %251 = vperm.xlu0 %1660, %v109_v26   ;;  %v118_v6 = vld [vmem:[%s2253_s2 + $0x118] sm:$0xff]  ;;  %v76_v8 = vld [vmem:[%s2251_s1 + $0xe8] sm:$0xff]  ;;  %v77_v9 = vld [vmem:[%s2251_s1 + $0xf0] sm:$0xff] }
  0x19   :  { %1559 = vmatprep.mubr.msk.f32.mxu0 %vm299_vm1, %v53_v25  ;;  %171 = vperm.xlu1 %1661, %v93_v27   ;;  %v116_v10 = vld [vmem:[%s2253_s2 + $0x108] sm:$0xff]  ;;  %v115_v11 = vld [vmem:[%s2253_s2 + $0x100] sm:$0xff]  ;;  %v78_v12 = vld [vmem:[%s2251_s1 + $0xf8] sm:$0xff] }
  0x1a   :  { %v79_v13 = vld [vmem:[%s2251_s1 + $0x100] sm:$0xff]  ;;  %v780_v14 = vld [vmem:[%s2254_s4 + $0x18] sm:$0xff]  ;;  %v779_v15 = vld [vmem:[%s2254_s4 + $0x10] sm:$0xff] }
  0x1b   :  { %v80_v16 = vld [vmem:[%s2251_s1 + $0x108] sm:$0xff]  ;;  %v81_v17 = vld [vmem:[%s2251_s1 + $0x110] sm:$0xff]  ;;  %v777_v19 = vld [vmem:[%s2254_s4] sm:$0xff] }
  0x1c   :  { %1560 = vmatmul.mubr.msk.f32.gmra.mxu0 %vm299_vm1, %v54_v28  ;;  %246 = vperm.xlu0 %1660, %v108_v30   ;;  %v778_v18 = vld [vmem:[%s2254_s4 + $0x8] sm:$0xff]  ;;  %v82_v20 = vld [vmem:[%s2251_s1 + $0x118] sm:$0xff]  ;;  %v1002_v22 = vld [vmem:[%s2255_s6 + $0x10] sm:$0xff] }
  0x1d   :  { %1562 = vmatprep.mubr.msk.f32.mxu0 %vm299_vm1, %v55_v29  ;;  %166 = vperm.xlu1 %1661, %v92_v31   ;;  %v1003_v21 = vld [vmem:[%s2255_s6 + $0x18] sm:$0xff]  ;;  %v1001_v23 = vld [vmem:[%s2255_s6 + $0x8] sm:$0xff]  ;;  %v1000_v24 = vld [vmem:[%s2255_s6] sm:$0xff] }
  0x1e   :  { %v1140_v25 = vld [vmem:[%s2256_s8 + $0x18] sm:$0xff]  ;;  %v1139_v26 = vld [vmem:[%s2256_s8 + $0x10] sm:$0xff]  ;;  %v1138_v27 = vld [vmem:[%s2256_s8 + $0x8] sm:$0xff] }
  0x1f   :  { %v1137_v28 = vld [vmem:[%s2256_s8] sm:$0xff]  ;;  %v766_v30 = vld [vmem:[%s2257_s3 + $0x8] sm:$0xff] }
  0x20   :  { %1563 = vmatmul.mubr.msk.f32.gmra.mxu0 %vm299_vm1, %v56_v32  ;;  %241 = vperm.xlu0 %1660, %v107_v34   ;;  %v1344_v29 = vld [vmem:[#allocation2] sm:$0x1] }
  0x21   :  { %1565 = vmatprep.mubr.msk.f32.mxu0 %vm299_vm1, %v57_v33  ;;  %161 = vperm.xlu1 %1661, %v91_v35  }
  0x22   :  { %878 = vmatprep.mubr.f32.mxu1 %v766_v30 }
  0x24   :  { %1566 = vmatmul.mubr.msk.f32.gmra.mxu0 %vm299_vm1, %v58_v36  ;;  %236 = vperm.xlu0 %1660, %v106_v38  }
  0x25   :  { %1568 = vmatprep.mubr.msk.f32.mxu0 %vm299_vm1, %v59_v37  ;;  %156 = vperm.xlu1 %1661, %v90_v39  }
  0x28   :  { %1569 = vmatmul.mubr.msk.f32.gmra.mxu0 %vm299_vm1, %v60_v40  ;;  %231 = vperm.xlu0 %1660, %v105_v42  }
  0x29   :  { %1571 = vmatprep.mubr.msk.f32.mxu0 %vm299_vm1, %v61_v41  ;;  %151 = vperm.xlu1 %1661, %v89_v43  }
  0x2c   :  { %1572 = vmatmul.mubr.msk.f32.gmra.mxu0 %vm299_vm1, %v62_v44  ;;  %226 = vperm.xlu0 %1660, %v104_v46  }
  0x2d   :  { %1574 = vmatprep.mubr.msk.f32.mxu0 %vm299_vm1, %v63_v45  ;;  %146 = vperm.xlu1 %1661, %v88_v47  }
  0x30   :  { %1575 = vmatmul.mubr.msk.f32.gmra.mxu0 %vm299_vm1, %v64_v48  ;;  %221 = vperm.xlu0 %1660, %v103_v50  }
  0x31   :  { %1577 = vmatprep.mubr.msk.f32.mxu0 %vm299_vm1, %v65_v49  ;;  %141 = vperm.xlu1 %1661, %v87_v51  }
  0x34   :  { %1578 = vmatmul.mubr.msk.f32.gmra.mxu0 %vm299_vm1, %v66_v52  ;;  %216 = vperm.xlu0 %1660, %v102_v54  }
  0x35   :  { %1580 = vmatprep.mubr.msk.f32.mxu0 %vm299_vm1, %v67_v53  ;;  %136 = vperm.xlu1 %1661, %v86_v55  }
  0x38   :  { %1581 = vmatmul.mubr.msk.f32.gmra.mxu0 %vm299_vm1, %v68_v56  ;;  %211 = vperm.xlu0 %1660, %v101_v58  }
  0x39   :  { %1583 = vmatprep.mubr.msk.f32.mxu0 %vm299_vm1, %v69_v57  ;;  %131 = vperm.xlu1 %1661, %v85_v59  }
  0x3c   :  { %1584 = vmatmul.mubr.msk.f32.gmra.mxu0 %vm299_vm1, %v70_v60  ;;  %206 = vperm.xlu0 %1660, %v100_v62  }
  0x3d   :  { %1586 = vmatprep.mubr.msk.f32.mxu0 %vm299_vm1, %v71_v61  ;;  %126 = vperm.xlu1 %1661, %v84_v63  }
  0x40   :  { %1587 = vmatmul.mubr.msk.f32.gmra.mxu0 %vm299_vm1, %v72_v0  ;;  %201 = vperm.xlu0 %1660, %v99_v2  }
  0x41   :  { %1589 = vmatprep.mubr.msk.f32.mxu0 %vm299_vm1, %v73_v1  ;;  %121 = vperm.xlu1 %1661, %v83_v3  }
  0x44   :  { %1590 = vmatmul.mubr.msk.f32.gmra.mxu0 %vm299_vm1, %v74_v4  ;;  %296 = vperm.xlu0 %1660, %v118_v6  }
  0x45   :  { %1592 = vmatprep.mubr.msk.f32.mxu0 %vm299_vm1, %v75_v5  ;;  %291 = vperm.xlu1 %1661, %v117_v7  }
  0x48   :  { %1593 = vmatmul.mubr.msk.f32.gmra.mxu0 %vm299_vm1, %v76_v8  ;;  %286 = vperm.xlu0 %1660, %v116_v10  }
  0x49   :  { %1595 = vmatprep.mubr.msk.f32.mxu0 %vm299_vm1, %v77_v9  ;;  %281 = vperm.xlu1 %1661, %v115_v11  }
  0x4c   :  { %1596 = vmatmul.mubr.msk.f32.gmra.mxu0 %vm299_vm1, %v78_v12  ;;  %798 = vperm.xlu0 %1660, %v780_v14  }
  0x4d   :  { %1598 = vmatprep.mubr.msk.f32.mxu0 %vm299_vm1, %v79_v13  ;;  %793 = vperm.xlu1 %1661, %v779_v15  }
  0x50   :  { %1599 = vmatmul.mubr.msk.f32.gmra.mxu0 %vm299_vm1, %v80_v16  ;;  %788 = vperm.xlu0 %1660, %v778_v18  }
  0x51   :  { %1601 = vmatprep.mubr.msk.f32.mxu0 %vm299_vm1, %v81_v17  ;;  %783 = vperm.xlu1 %1661, %v777_v19  }
  0x54   :  { %1602 = vmatmul.mubr.msk.f32.gmra.mxu0 %vm299_vm1, %v82_v20  ;;  %1021 = vperm.xlu0 %1660, %v1003_v21  }
  0x55   :  { %1016 = vperm.xlu1 %1661, %v1002_v22  }
  0x58   :  { %1011 = vperm.xlu0 %1660, %v1001_v23  }
  0x59   :  { %1006 = vperm.xlu1 %1661, %v1000_v24  }
  0x5c   :  { %1158 = vperm.xlu0 %1660, %v1140_v25  }
  0x5d   :  { %1153 = vperm.xlu1 %1661, %v1139_v26  }
  0x60   :  { %1148 = vperm.xlu0 %1660, %v1138_v27  }
  0x61   :  { %1143 = vperm.xlu1 %1661, %v1137_v28  }
  0x64   :  { %1347 = vperm.xlu0 %1660, %v1344_v29  }
  0x7f   :  { %v277_v31 = vpop.permute.xlu0 %276 }
  0x80   :  { %v2044_v32 = vpop.permute.xlu1 %271 }
  0x83   :  { %v197_v33 = vpop.permute.xlu0 %196 }
  0x84   :  { %v192_v34 = vpop.permute.xlu1 %191 }
  0x87   :  { %v267_v36 = vpop.permute.xlu0 %266 }
  0x88   :  { %v187_v38 = vpop.permute.xlu1 %186 }
  0x8b   :  { %v262_v41 = vpop.permute.xlu0 %261 }
  0x8c   :  { %v182_v43 = vpop.permute.xlu1 %181 }
  0x8f   :  { %v257_v46 = vpop.permute.xlu0 %256 }
  0x90   :  { %v177_v48 = vpop.permute.xlu1 %176 }
  0x93   :  { %v252_v51 = vpop.permute.xlu0 %251 }
  0x94   :  { %v2066_v53 = vpop.permute.xlu1 %171 }
  0x97   :  { %v2070_v56 = vpop.permute.xlu0 %246 }
  0x98   :  { %v2072_v58 = vpop.permute.xlu1 %166 }
  0x9b   :  { %v2074_v61 = vpop.permute.xlu0 %241 }
  0x9c   :  { %v2078_v63 = vpop.permute.xlu1 %161 }
  0x9f   :  { %v2084_v2 = vpop.permute.xlu0 %236 }
  0xa0   :  { %v2088_v4 = vpop.permute.xlu1 %156 }
  0xa3   :  { %v2094_v7 = vpop.permute.xlu0 %231 }
  0xa4   :  { %v2098_v9 = vpop.permute.xlu1 %151 }
  0xa7   :  { %v2102_v12 = vpop.permute.xlu0 %226 }
  0xa8   :  { %v2104_v14 = vpop.permute.xlu1 %146 }
  0xab   :  { %v2106_v17 = vpop.permute.xlu0 %221 }
  0xac   :  { %v2108_v19 = vpop.permute.xlu1 %141 }
  0xaf   :  { %v2110_v26 = vpop.permute.xlu0 %216 }
  0xd0   :  { %v2046_v35 = vpop.f32.mrf.mxu0 }
  0xd1   :  { %2262 = vst [vmem:[#allocation3_spill] sm:$0xff] %v2046_v35  ;;  %v2113_v35 = vpop.permute.xlu1 %136 }
  0xd2   :  { %v2048_v37 = vpop.f32.mrf.mxu0 }
  0xd3   :  { %2263 = vst [vmem:[#allocation4_spill] sm:$0xff] %v2048_v37 }
  0xd4   :  { %v2050_v39 = vpop.f32.mrf.mxu0 }
  0xd6   :  { %v2052_v40 = vpop.f32.mrf.mxu0 }
  0xd8   :  { %v2054_v42 = vpop.f32.mrf.mxu0 }
  0xda   :  { %v2056_v44 = vpop.f32.mrf.mxu0 }
  0xdc   :  { %v2058_v45 = vpop.f32.mrf.mxu0 }
  0xde   :  { %v2060_v47 = vpop.f32.mrf.mxu0 }
  0xe0   :  { %v2062_v49 = vpop.f32.mrf.mxu0 }
  0xe2   :  { %v2064_v50 = vpop.f32.mrf.mxu0 }
  0xe4   :  { %v1567_v52 = vpop.f32.mrf.mxu0 }
  0xe6   :  { %v2068_v54 = vpop.f32.mrf.mxu0 }
  0xe8   :  { %v1570_v55 = vpop.f32.mrf.mxu0 }
  0xe9   :  { %v544_v27 = vadd.f32 %v1570_v55, %v187_v38 }
  0xea   :  { %v538_v57 = vpop.f32.mrf.mxu0 }
  0xeb   :  { %v706_v38 = vmul.f32 0.01, %v544_v27  ;;  %vm670_vm7 = vcmp.gt.f32.partialorder %v544_v27, 0.0 }
  0xec   :  { %v1573_v59 = vpop.f32.mrf.mxu0 }
  0xed   :  { %v554_v20 = vadd.f32 %v1573_v59, %v197_v33 }
  0xee   :  { %v548_v60 = vpop.f32.mrf.mxu0 }
  0xef   :  { %v549_v22 = vadd.f32 %v548_v60, %v192_v34  ;;  %vm672_vm2 = vcmp.gt.f32.partialorder %v554_v20, 0.0  ;;  %v708_v29 = vmul.f32 0.01, %v554_v20  ;;  %v534_v60 = vadd.f32 %v1567_v52, %v177_v48 }
  0xf0   :  { %v2076_v62 = vpop.f32.mrf.mxu0 }
  0xf1   :  { %2264 = vst [vmem:[#allocation5_spill] sm:$0xff] %v2076_v62  ;;  %v539_v62 = vadd.f32 %v538_v57, %v182_v43  ;;  %v707_v33 = vmul.f32 0.01, %v549_v22  ;;  %vm671_vm4 = vcmp.gt.f32.partialorder %v549_v22, 0.0  ;;  %v744_v55 = vsel %vm672_vm2, %v554_v20, %v708_v29 }
  0xf2   :  { %v2080_v0 = vpop.f32.mrf.mxu0  ;;  %v529_v43 = vadd.f32 %v2068_v54, %v2066_v53  ;;  %v742_v53 = vsel %vm670_vm7, %v544_v27, %v706_v38  ;;  %vm668_vm11 = vcmp.gt.f32.partialorder %v534_v60, 0.0 }
  0xf3   :  { %2265 = vst [vmem:[#allocation6_spill] sm:$0xff] %v2080_v0  ;;  %v743_v57 = vsel %vm671_vm4, %v549_v22, %v707_v33  ;;  %vm669_vm9 = vcmp.gt.f32.partialorder %v539_v62, 0.0 }
  0xf4   :  { %v2082_v1 = vpop.f32.mrf.mxu0  ;;  %vm667_vm13 = vcmp.gt.f32.partialorder %v529_v43, 0.0 }
  0xf6   :  { %v2086_v3 = vpop.f32.mrf.mxu0 }
  0xf8   :  { %v2090_v5 = vpop.f32.mrf.mxu0 }
  0xfa   :  { %v2092_v6 = vpop.f32.mrf.mxu0 }
  0xfc   :  { %v2096_v8 = vpop.f32.mrf.mxu0 }
  0xfe   :  { %v2100_v10 = vpop.f32.mrf.mxu0 }
 0x100   :  { %v1588_v11 = vpop.f32.mrf.mxu0 }
 0x101   :  { %v604_v48 = vadd.f32 %v1588_v11, %v2070_v56  ;;  %v519_v56 = vadd.f32 %v2064_v50, %v2078_v63  ;;  %v703_v11 = vmul.f32 0.01, %v529_v43  ;;  %v589_v50 = vadd.f32 %v2100_v10, %v2094_v7 }
 0x102   :  { %v598_v13 = vpop.f32.mrf.mxu0  ;;  %v504_v10 = vadd.f32 %v2054_v42, %v2104_v14  ;;  %v574_v14 = vadd.f32 %v2082_v1, %v2110_v26 }
 0x103   :  { %v599_v54 = vadd.f32 %v598_v13, %v2074_v61  ;;  %v514_v61 = vadd.f32 %v2058_v45, %v2088_v4  ;;  %vm682_vm14 = vcmp.gt.f32.partialorder %v604_v48, 0.0  ;;  %v701_v27 = vmul.f32 0.01, %v519_v56 }
 0x104   :  { %v1591_v15 = vpop.f32.mrf.mxu0  ;;  %v739_v45 = vsel %vm667_vm13, %v529_v43, %v703_v11  ;;  %v584_v4 = vadd.f32 %v2090_v5, %v2102_v12  ;;  %vm665_vm1 = vcmp.gt.f32.partialorder %v519_v56, 0.0  ;;  %v715_v33 = vmul.f32 0.01, %v589_v50 }
 0x105   :  { %v614_v59 = vadd.f32 %v1591_v15, %v257_v46  ;;  %v705_v46 = vmul.f32 0.01, %v539_v62  ;;  %v704_v15 = vmul.f32 0.01, %v534_v60  ;;  %vm681_vm0 = vcmp.gt.f32.partialorder %v599_v54, 0.0 }
 0x106   :  { %v608_v16 = vpop.f32.mrf.mxu0  ;;  %v499_v12 = vadd.f32 %v2056_v44, %v2108_v19  ;;  %v737_v42 = vsel %vm665_vm1, %v519_v56, %v701_v27  ;;  %vm679_vm4 = vcmp.gt.f32.partialorder %v589_v50, 0.0  ;;  %v698_v44 = vmul.f32 0.01, %v504_v10 }
 0x107   :  { %v720_v52 = vmul.f32 0.01, %v614_v59  ;;  %vm684_vm10 = vcmp.gt.f32.partialorder %v614_v59, 0.0  ;;  %v741_v22 = vsel %vm669_vm9, %v539_v62, %v705_v46  ;;  %v717_v62 = vmul.f32 0.01, %v599_v54 }
 0x108   :  { %v1594_v18 = vpop.f32.mrf.mxu0  ;;  %v751_v1 = vsel %vm679_vm4, %v589_v50, %v715_v33  ;;  %vm662_vm7 = vcmp.gt.f32.partialorder %v504_v10, 0.0  ;;  %v712_v43 = vmul.f32 0.01, %v574_v14  ;;  %vm661_vm9 = vcmp.gt.f32.partialorder %v499_v12, 0.0 }
 0x109   :  { %v624_v24 = vadd.f32 %v1594_v18, %v267_v36 }
 0x10a   :  { %v618_v21 = vpop.f32.mrf.mxu0 }
 0x10b   :  { %v619_v30 = vadd.f32 %v618_v21, %v262_v41  ;;  %v722_v34 = vmul.f32 0.01, %v624_v24  ;;  %vm686_vm6 = vcmp.gt.f32.partialorder %v624_v24, 0.0  ;;  %v609_v41 = vadd.f32 %v608_v16, %v252_v51  ;;  %v2116_v21 = vpop.permute.xlu0 %211  ;;  %v2122_v51 = vpop.permute.xlu1 %131 }
 0x10c   :  { %v1597_v23 = vpop.f32.mrf.mxu0  ;;  %v569_v38 = vadd.f32 %v2086_v3, %v2116_v21  ;;  %v489_v26 = vadd.f32 %v2052_v40, %v2122_v51  ;;  %v2267_v21 = vld [vmem:[#allocation3_spill] sm:$0xff]  ;;  %v2268_v40 = vld [vmem:[#allocation6_spill] sm:$0xff] }
 0x10d   :  { %v634_v25 = vadd.f32 %v1597_v23, %v277_v31  ;;  %vm685_vm8 = vcmp.gt.f32.partialorder %v619_v30, 0.0  ;;  %v719_v16 = vmul.f32 0.01, %v609_v41  ;;  %vm683_vm12 = vcmp.gt.f32.partialorder %v609_v41, 0.0 }
 0x10e   :  { %v628_v28 = vpop.f32.mrf.mxu0  ;;  %v756_v23 = vsel %vm684_vm10, %v614_v59, %v720_v52  ;;  %v753_v59 = vsel %vm681_vm0, %v599_v54, %v717_v62  ;;  %v734_v52 = vsel %vm662_vm7, %v504_v10, %v698_v44  ;;  %vm676_vm10 = vcmp.gt.f32.partialorder %v574_v14, 0.0  ;;  %v765_v10 = vld [vmem:[%s2257_s3] sm:$0xff]  ;;  %v776_v44 = vld [vmem:[%s2257_s3 + $0x58] sm:$0xff] }
 0x10f   :  { %v629_v37 = vadd.f32 %v628_v28, %v2044_v32  ;;  %vm688_vm3 = vcmp.gt.f32.partialorder %v634_v25, 0.0  ;;  %v724_v0 = vmul.f32 0.01, %v634_v25  ;;  %v721_v32 = vmul.f32 0.01, %v619_v30 }
 0x110   :  { %v755_v63 = vsel %vm683_vm12, %v609_v41, %v719_v16  ;;  %v2138_v28 = vpop.f32.mrf.mxu0  ;;  %v697_v41 = vmul.f32 0.01, %v499_v12  ;;  %v711_v51 = vmul.f32 0.01, %v569_v38  ;;  %v695_v16 = vmul.f32 0.01, %v489_v26 }
 0x111   :  { %v723_v36 = vmul.f32 0.01, %v629_v37  ;;  %v760_v31 = vsel %vm688_vm3, %v634_v25, %v724_v0  ;;  %vm687_vm5 = vcmp.gt.f32.partialorder %v629_v37, 0.0  ;;  %v758_v0 = vsel %vm686_vm6, %v624_v24, %v722_v34  ;;  %v207_v24 = vpop.permute.xlu0 %206 }
 0x112   :  { %1463 = vmatprep.subr.mxu1 %v760_v31  ;;  %v757_v20 = vsel %vm685_vm8, %v619_v30, %v721_v32  ;;  %v740_v25 = vsel %vm668_vm11, %v534_v60, %v704_v15  ;;  %v700_v30 = vmul.f32 0.01, %v514_v61  ;;  %vm664_vm3 = vcmp.gt.f32.partialorder %v514_v61, 0.0  ;;  %v2269_v15 = vld [vmem:[#allocation4_spill] sm:$0xff] }
 0x113   :  { %1464 = vmatpush3.msra.mxu1 %v744_v55  ;;  %v759_v18 = vsel %vm687_vm5, %v629_v37, %v723_v36  ;;  %v524_v37 = vadd.f32 %v2062_v49, %v2072_v58  ;;  %v594_v49 = vadd.f32 %v2096_v8, %v2084_v2  ;;  %v718_v58 = vmul.f32 0.01, %v604_v48  ;;  %v127_v2 = vpop.permute.xlu1 %126  ;;  %v2151_v36 = vpop.f32.mrf.mxu0 }
 0x114   :  { %1465 = vmatprep.subr.mxu1 %v759_v18  ;;  %v509_v8 = vadd.f32 %v2060_v47, %v2098_v9  ;;  %v579_v9 = vadd.f32 %v2092_v6, %v2106_v17  ;;  %v714_v31 = vmul.f32 0.01, %v584_v4  ;;  %v494_v60 = vadd.f32 %v2050_v39, %v2113_v35  ;;  %v2266_v39 = vld [vmem:[#allocation5_spill] sm:$0xff] }
 0x115   :  { %1466 = vmatpush3.msra.mxu1 %v743_v57  ;;  %v702_v13 = vmul.f32 0.01, %v524_v37  ;;  %vm666_vm15 = vcmp.gt.f32.partialorder %v524_v37, 0.0  ;;  %v716_v29 = vmul.f32 0.01, %v594_v49  ;;  %v754_v7 = vsel %vm682_vm14, %v604_v48, %v718_v58  ;;  %v202_v5 = vpop.permute.xlu0 %201  ;;  %v1603_v32 = vpop.f32.mrf.mxu0 }
 0x116   :  { %1467 = vmatprep.subr.mxu1 %v758_v0  ;;  %vm680_vm2 = vcmp.gt.f32.partialorder %v594_v49, 0.0  ;;  %v699_v34 = vmul.f32 0.01, %v509_v8  ;;  %vm663_vm5 = vcmp.gt.f32.partialorder %v509_v8, 0.0  ;;  %v736_v19 = vsel %vm664_vm3, %v514_v61, %v700_v30 }
 0x117   :  { %1468 = vmatpush3.msra.mxu1 %v742_v53  ;;  %v738_v47 = vsel %vm666_vm15, %v524_v37, %v702_v13  ;;  %v752_v6 = vsel %vm680_vm2, %v594_v49, %v716_v29  ;;  %v122_v17 = vpop.permute.xlu1 %121  ;;  %vm678_vm6 = vcmp.gt.f32.partialorder %v584_v4, 0.0  ;;  %v713_v55 = vmul.f32 0.01, %v579_v9 }
 0x118   :  { %1469 = vmatprep.subr.mxu1 %v757_v20  ;;  %v735_v35 = vsel %vm663_vm5, %v509_v8, %v699_v34  ;;  %vm677_vm8 = vcmp.gt.f32.partialorder %v579_v9, 0.0  ;;  %v564_v18 = vadd.f32 %v2266_v39, %v207_v24  ;;  %v750_v46 = vsel %vm678_vm6, %v584_v4, %v714_v31  ;;  %v648_v20 = vpop.f32.mrf.mxu0  ;;  %v774_v31 = vld [vmem:[%s2257_s3 + $0x48] sm:$0xff] }
 0x119   :  { %1470 = vmatpush3.msra.mxu1 %v741_v22  ;;  %v297_v3 = vpop.permute.xlu0 %296  ;;  %v484_v57 = vadd.f32 %v2267_v21, %v127_v2  ;;  %v696_v48 = vmul.f32 0.01, %v494_v60  ;;  %v559_v0 = vadd.f32 %v2268_v40, %v202_v5  ;;  %v749_v37 = vsel %vm677_vm8, %v579_v9, %v713_v55  ;;  %v768_v5 = vld [vmem:[%s2257_s3 + $0x18] sm:$0xff] }
 0x11a   :  { %1471 = vmatprep.subr.mxu1 %v756_v23  ;;  %vm660_vm11 = vcmp.gt.f32.partialorder %v494_v60, 0.0  ;;  %v479_v53 = vadd.f32 %v2269_v15, %v122_v17  ;;  %v733_v56 = vsel %vm661_vm9, %v499_v12, %v697_v41  ;;  %vm675_vm12 = vcmp.gt.f32.partialorder %v569_v38, 0.0  ;;  %v772_v12 = vld [vmem:[%s2257_s3 + $0x38] sm:$0xff]  ;;  %v770_v17 = vld [vmem:[%s2257_s3 + $0x28] sm:$0xff] }
 0x11b   :  { %1472 = vmatpush3.msra.mxu1 %v740_v25  ;;  %v292_v54 = vpop.permute.xlu1 %291  ;;  %v710_v11 = vmul.f32 0.01, %v564_v18  ;;  %v654_v22 = vadd.f32 %v1603_v32, %v297_v3  ;;  %v748_v49 = vsel %vm676_vm10, %v574_v14, %v712_v43  ;;  %vm659_vm13 = vcmp.gt.f32.partialorder %v489_v26, 0.0  ;;  %v775_v14 = vld [vmem:[%s2257_s3 + $0x50] sm:$0xff] }
 0x11c   :  { %1473 = vmatprep.subr.mxu1 %v755_v63  ;;  %v694_v58 = vmul.f32 0.01, %v484_v57  ;;  %v732_v23 = vsel %vm660_vm11, %v494_v60, %v696_v48  ;;  %vm674_vm14 = vcmp.gt.f32.partialorder %v564_v18, 0.0  ;;  %v709_v24 = vmul.f32 0.01, %v559_v0  ;;  %v773_v60 = vld [vmem:[%s2257_s3 + $0x40] sm:$0xff] }
 0x11d   :  { %1474 = vmatpush3.msra.mxu1 %v739_v45  ;;  %v649_v61 = vadd.f32 %v648_v20, %v292_v54  ;;  %v747_v13 = vsel %vm675_vm12, %v569_v38, %v711_v51  ;;  %vm658_vm15 = vcmp.gt.f32.partialorder %v484_v57, 0.0  ;;  %v287_v25 = vpop.permute.xlu0 %286  ;;  %v693_v50 = vmul.f32 0.01, %v479_v53 }
 0x11e   :  { %1475 = vmatprep.subr.mxu1 %v754_v7  ;;  %v731_v62 = vsel %vm659_vm13, %v489_v26, %v695_v16  ;;  %vm673_vm0 = vcmp.gt.f32.partialorder %v559_v0, 0.0  ;;  %v644_v63 = vadd.f32 %v2138_v28, %v287_v25  ;;  %v728_v2 = vmul.f32 0.01, %v654_v22  ;;  %v769_v28 = vld [vmem:[%s2257_s3 + $0x20] sm:$0xff] }
 0x11f   :  { %1476 = vmatpush3.msra.mxu1 %v738_v47  ;;  %v746_v8 = vsel %vm674_vm14, %v564_v18, %v710_v11  ;;  %vm657_vm1 = vcmp.gt.f32.partialorder %v479_v53, 0.0  ;;  %v282_v27 = vpop.permute.xlu1 %281  ;;  %v730_v45 = vsel %vm658_vm15, %v484_v57, %v694_v58  ;;  %vm692_vm2 = vcmp.gt.f32.partialorder %v654_v22, 0.0 }
 0x120   :  { %1477 = vmatprep.subr.mxu1 %v753_v59  ;;  %v639_v4 = vadd.f32 %v2151_v36, %v282_v27  ;;  %v727_v29 = vmul.f32 0.01, %v649_v61  ;;  %v745_v7 = vsel %vm673_vm0, %v559_v0, %v709_v24  ;;  %v729_v30 = vsel %vm657_vm1, %v479_v53, %v693_v50 }
 0x121   :  { %1478 = vmatpush3.msra.mxu1 %v737_v42  ;;  %vm691_vm3 = vcmp.gt.f32.partialorder %v649_v61, 0.0  ;;  %v726_v47 = vmul.f32 0.01, %v644_v63  ;;  %v764_v9 = vsel %vm692_vm2, %v654_v22, %v728_v2  ;;  %vm690_vm4 = vcmp.gt.f32.partialorder %v644_v63, 0.0  ;;  %v771_v42 = vld [vmem:[%s2257_s3 + $0x30] sm:$0xff]  ;;  %v999_v2 = vld [vmem:[%s2258_s5 + $0x18] sm:$0xff] }
 0x122   :  { %1479 = vmatprep.subr.mxu1 %v752_v6  ;;  %v725_v33 = vmul.f32 0.01, %v639_v4  ;;  %v763_v59 = vsel %vm691_vm3, %v649_v61, %v727_v29  ;;  %vm689_vm5 = vcmp.gt.f32.partialorder %v639_v4, 0.0  ;;  %v767_v6 = vld [vmem:[%s2257_s3 + $0x10] sm:$0xff]  ;;  %vm801_vm6 = vcmask 261120  }
 0x123   :  { %1480 = vmatpush3.msra.mxu1 %v736_v19  ;;  %v762_v34 = vsel %vm690_vm4, %v644_v63, %v726_v47  ;;  %v996_v19 = vld [vmem:[%s2258_s5] sm:$0xff]  ;;  %v794_v18 = vpop.permute.xlu1 %793  ;;  %v998_v63 = vld [vmem:[%s2258_s5 + $0x10] sm:$0xff]  ;;  %vm1668_vm15 = vmmov 0  }
 0x124   :  { %1481 = vmatprep.subr.mxu1 %v751_v1  ;;  %v761_v36 = vsel %vm689_vm5, %v639_v4, %v725_v33 }
 0x125   :  { %1482 = vmatpush3.msra.mxu1 %v735_v35  ;;  %v799_v35 = vpop.permute.xlu0 %798 }
 0x126   :  { %1483 = vmatprep.subr.mxu1 %v750_v46 }
 0x127   :  { %1484 = vmatpush3.msra.mxu1 %v734_v52 }
 0x128   :  { %1485 = vmatprep.subr.mxu1 %v749_v37  ;;  %v784_v37 = vpop.permute.xlu1 %783 }
 0x129   :  { %1486 = vmatpush3.msra.mxu1 %v733_v56  ;;  %v789_v52 = vpop.permute.xlu0 %788 }
 0x12a   :  { %1487 = vmatprep.subr.mxu1 %v748_v49 }
 0x12b   :  { %1488 = vmatpush3.msra.mxu1 %v732_v23 }
 0x12c   :  { %1489 = vmatprep.subr.mxu1 %v747_v13 }
 0x12d   :  { %1490 = vmatpush3.msra.mxu1 %v731_v62  ;;  %v997_v62 = vld [vmem:[%s2258_s5 + $0x8] sm:$0xff]  ;;  %v1022_v27 = vpop.permute.xlu0 %1021 }
 0x12e   :  { %1491 = vmatprep.subr.mxu1 %v746_v8  ;;  %v1133_v8 = vld [vmem:[%s2259_s7] sm:$0xff] }
 0x12f   :  { %1492 = vmatpush3.msra.mxu1 %v730_v45  ;;  %v1017_v45 = vpop.permute.xlu1 %1016 }
 0x130   :  { %1493 = vmatprep.subr.mxu1 %v745_v7 }
 0x131   :  { %1494 = vmatpush3.msra.mxu1 %v729_v30  ;;  %v1012_v7 = vpop.permute.xlu0 %1011 }
 0x132   :  { %879 = vmatmul.mubr.f32.vlgmr.msra.gmra.mxu1 %v765_v10  ;;  %1604 = vmatprep.subr.mxu1 %v764_v9 }
 0x133   :  { %1605 = vmatpush3.msra.mxu1 %v764_v9  ;;  %883 = vmatprep.mubr.f32.mxu1 %v769_v28  ;;  %v1007_v47 = vpop.permute.xlu1 %1006 }
 0x134   :  { %1606 = vmatprep.subr.mxu1 %v763_v59 }
 0x135   :  { %1607 = vmatpush3.msra.mxu1 %v763_v59 }
 0x136   :  { %884 = vmatmul.mubr.f32.gmra.mxu1 %v768_v5  ;;  %1608 = vmatprep.subr.mxu1 %v762_v34 }
 0x137   :  { %1609 = vmatpush3.msra.mxu1 %v762_v34  ;;  %888 = vmatprep.mubr.f32.mxu1 %v772_v12 }
 0x138   :  { %1610 = vmatprep.subr.mxu1 %v761_v36 }
 0x139   :  { %1611 = vmatpush3.msra.mxu1 %v761_v36 }
 0x13a   :  { %889 = vmatmul.mubr.f32.gmra.mxu1 %v771_v42 }
 0x13b   :  { %893 = vmatprep.mubr.f32.mxu1 %v775_v14 }
 0x13e   :  { %894 = vmatmul.mubr.f32.gmra.mxu1 %v774_v31 }
 0x13f   :  { %1612 = vmatprep.mubr.msk.f32.mxu1 %vm801_vm6, %v767_v6 }
 0x142   :  { %1613 = vmatmul.mubr.msk.f32.vlgmr.msra.gmra.mxu1 %vm801_vm6, %v770_v17  ;;  %v1134_v17 = vld [vmem:[%s2259_s7 + $0x8] sm:$0xff] }
 0x143   :  { %1615 = vmatprep.mubr.msk.f32.mxu1 %vm801_vm6, %v773_v60  ;;  %v1135_v60 = vld [vmem:[%s2259_s7 + $0x10] sm:$0xff] }
 0x146   :  { %1616 = vmatmul.mubr.msk.f32.gmra.mxu1 %vm801_vm6, %v776_v44  ;;  %v1136_v44 = vld [vmem:[%s2259_s7 + $0x18] sm:$0xff] }
 0x147   :  { %1626 = vmatprep.mubr.msk.f32.mxu1 %vm801_vm6, %v996_v19  ;;  %v1667_v19 = vmov 0.0  }
 0x1f2   :  { %v1495_v38 = vpop.f32.mrf.mxu1 }
 0x1f4   :  { %v1496_v55 = vpop.f32.mrf.mxu1 }
 0x1f5   :  { %v1497_v57 = vadd.f32 %v1496_v55, %v1495_v38  ;;  %v1159_v38 = vpop.permute.xlu0 %1158  ;;  %v1154_v55 = vpop.permute.xlu1 %1153 }
 0x1f6   :  { %v1498_v1 = vpop.f32.mrf.mxu1 }
 0x1f7   :  { %v881_v54 = vadd.f32 %v1497_v57, %v784_v37  ;;  %v1270_v37 = vld [vmem:[%s2260_s9] sm:$0xff] }
 0x1f8   :  { %v1499_v26 = vpop.f32.mrf.mxu1 }
 0x1f9   :  { %v1500_v46 = vadd.f32 %v1499_v26, %v1498_v1 }
 0x1fa   :  { %v1501_v41 = vpop.f32.mrf.mxu1 }
 0x1fb   :  { %v886_v0 = vadd.f32 %v1500_v46, %v789_v52 }
 0x1fc   :  { %v1502_v32 = vpop.f32.mrf.mxu1 }
 0x1fd   :  { %v1503_v48 = vadd.f32 %v1502_v32, %v1501_v41  ;;  %v1149_v41 = vpop.permute.xlu0 %1148 }
 0x1fe   :  { %v1504_v39 = vpop.f32.mrf.mxu1 }
 0x1ff   :  { %v891_v20 = vadd.f32 %v1503_v48, %v794_v18  ;;  %v1144_v18 = vpop.permute.xlu1 %1143 }
 0x200   :  { %v1505_v43 = vpop.f32.mrf.mxu1 }
 0x201   :  { %v1506_v3 = vadd.f32 %v1505_v43, %v1504_v39 }
 0x202   :  { %v1614_v21 = vpop.f32.mrf.mxu1 }
 0x203   :  { %v896_v51 = vadd.f32 %v1506_v3, %v799_v35  ;;  %v971_v53 = vadd.f32 %v1614_v21, %v886_v0 }
 0x204   :  { %v965_v40 = vpop.f32.mrf.mxu1 }
 0x205   :  { %v966_v11 = vadd.f32 %v965_v40, %v881_v54  ;;  %v989_v58 = vmul.f32 0.01, %v971_v53  ;;  %vm985_vm9 = vcmp.gt.f32.partialorder %v971_v53, 0.0 }
 0x206   :  { %v1617_v15 = vpop.f32.mrf.mxu1 }
 0x207   :  { %v981_v16 = vadd.f32 %v1617_v15, %v896_v51  ;;  %v988_v61 = vmul.f32 0.01, %v966_v11  ;;  %vm984_vm10 = vcmp.gt.f32.partialorder %v966_v11, 0.0  ;;  %v993_v25 = vsel %vm985_vm9, %v971_v53, %v989_v58 }
 0x208   :  { %v975_v56 = vpop.f32.mrf.mxu1  ;;  %v1350_v53 = vlaneseq }
 0x209   :  { %v991_v22 = vmul.f32 0.01, %v981_v16  ;;  %v976_v49 = vadd.f32 %v975_v56, %v891_v20  ;;  %vm987_vm7 = vcmp.gt.f32.partialorder %v981_v16, 0.0  ;;  %v992_v50 = vsel %vm984_vm10, %v966_v11, %v988_v61  ;;  %v1348_v20 = vpop.permute.xlu0 %1347 }
 0x20a   :  { %v1351_v54 = vshrl.u32 %v1350_v53, 7 }
 0x20b   :  { %v990_v23 = vmul.f32 0.01, %v976_v49  ;;  %v995_v24 = vsel %vm987_vm7, %v981_v16, %v991_v22  ;;  %vm986_vm8 = vcmp.gt.f32.partialorder %v976_v49, 0.0 }
 0x20c   :  { %1618 = vmatprep.subr.mxu1 %v995_v24  ;;  %v1352_v16 = vsub.s32 0, %v1351_v54 }
 0x20d   :  { %1619 = vmatpush3.msra.mxu1 %v995_v24  ;;  %v994_v13 = vsel %vm986_vm8, %v976_v49, %v990_v23 }
 0x20e   :  { %1620 = vmatprep.subr.mxu1 %v994_v13  ;;  %v1353_v56 = vrot.slane %v1348_v20, %v1352_v16 }
 0x20f   :  { %1621 = vmatpush3.msra.mxu1 %v994_v13 }
 0x210   :  { %1622 = vmatprep.subr.mxu1 %v993_v25 }
 0x211   :  { %1623 = vmatpush3.msra.mxu1 %v993_v25 }
 0x212   :  { %1624 = vmatprep.subr.mxu1 %v992_v50 }
 0x213   :  { %1625 = vmatpush3.msra.mxu1 %v992_v50 }
 0x214   :  { %1627 = vmatmul.mubr.msk.f32.vlgmr.msra.gmra.mxu1 %vm801_vm6, %v997_v62 }
 0x215   :  { %1629 = vmatprep.mubr.msk.f32.mxu1 %vm801_vm6, %v998_v63 }
 0x218   :  { %1630 = vmatmul.mubr.msk.f32.gmra.mxu1 %vm801_vm6, %v999_v2 }
 0x219   :  { %1640 = vmatprep.mubr.msk.f32.mxu1 %vm801_vm6, %v1133_v8 }
 0x2d4   :  { %v1628_v4 = vpop.f32.mrf.mxu1 }
 0x2d5   :  { %v1108_v30 = vadd.f32 %v1628_v4, %v1012_v7 }
 0x2d6   :  { %v1102_v29 = vpop.f32.mrf.mxu1 }
 0x2d7   :  { %v1103_v33 = vadd.f32 %v1102_v29, %v1007_v47  ;;  %v1126_v12 = vmul.f32 0.01, %v1108_v30  ;;  %vm1122_vm13 = vcmp.gt.f32.partialorder %v1108_v30, 0.0 }
 0x2d8   :  { %v1631_v10 = vpop.f32.mrf.mxu1 }
 0x2d9   :  { %v1118_v28 = vadd.f32 %v1631_v10, %v1022_v27  ;;  %v1125_v42 = vmul.f32 0.01, %v1103_v33  ;;  %vm1121_vm14 = vcmp.gt.f32.partialorder %v1103_v33, 0.0  ;;  %v1130_v31 = vsel %vm1122_vm13, %v1108_v30, %v1126_v12 }
 0x2da   :  { %v1112_v9 = vpop.f32.mrf.mxu1 }
 0x2db   :  { %v1128_v59 = vmul.f32 0.01, %v1118_v28  ;;  %v1113_v5 = vadd.f32 %v1112_v9, %v1017_v45  ;;  %vm1124_vm11 = vcmp.gt.f32.partialorder %v1118_v28, 0.0  ;;  %v1129_v6 = vsel %vm1121_vm14, %v1103_v33, %v1125_v42 }
 0x2dd   :  { %v1127_v34 = vmul.f32 0.01, %v1113_v5  ;;  %v1132_v36 = vsel %vm1124_vm11, %v1118_v28, %v1128_v59  ;;  %vm1123_vm12 = vcmp.gt.f32.partialorder %v1113_v5, 0.0 }
 0x2de   :  { %1632 = vmatprep.subr.mxu1 %v1132_v36 }
 0x2df   :  { %1633 = vmatpush3.msra.mxu1 %v1132_v36  ;;  %v1131_v14 = vsel %vm1123_vm12, %v1113_v5, %v1127_v34 }
 0x2e0   :  { %1634 = vmatprep.subr.mxu1 %v1131_v14 }
 0x2e1   :  { %1635 = vmatpush3.msra.mxu1 %v1131_v14 }
 0x2e2   :  { %1636 = vmatprep.subr.mxu1 %v1130_v31 }
 0x2e3   :  { %1637 = vmatpush3.msra.mxu1 %v1130_v31 }
 0x2e4   :  { %1638 = vmatprep.subr.mxu1 %v1129_v6 }
 0x2e5   :  { %1639 = vmatpush3.msra.mxu1 %v1129_v6 }
 0x2e6   :  { %1641 = vmatmul.mubr.msk.f32.vlgmr.msra.gmra.mxu1 %vm801_vm6, %v1134_v17  ;;  %1646 = vmatprep.subr.mxu1 %v1667_v19 }
 0x2e7   :  { %1643 = vmatprep.mubr.msk.f32.mxu1 %vm801_vm6, %v1135_v60 }
 0x2ea   :  { %1644 = vmatmul.mubr.msk.f32.gmra.mxu1 %vm801_vm6, %v1136_v44 }
 0x2eb   :  { %1654 = vmatprep.mubr.msk.f32.mxu1 %vm1668_vm15, %v1667_v19 }
 0x3a6   :  { %v1642_v1 = vpop.f32.mrf.mxu1 }
 0x3a7   :  { %v1245_v35 = vadd.f32 %v1642_v1, %v1149_v41 }
 0x3a8   :  { %v1239_v26 = vpop.f32.mrf.mxu1 }
 0x3a9   :  { %v1240_v46 = vadd.f32 %v1239_v26, %v1144_v18  ;;  %v1263_v57 = vmul.f32 0.01, %v1245_v35  ;;  %vm1259_vm2 = vcmp.gt.f32.partialorder %v1245_v35, 0.0 }
 0x3aa   :  { %v1645_v32 = vpop.f32.mrf.mxu1 }
 0x3ab   :  { %v1255_v39 = vadd.f32 %v1645_v32, %v1159_v38  ;;  %v1262_v40 = vmul.f32 0.01, %v1240_v46  ;;  %vm1258_vm3 = vcmp.gt.f32.partialorder %v1240_v46, 0.0  ;;  %v1267_v51 = vsel %vm1259_vm2, %v1245_v35, %v1263_v57 }
 0x3ac   :  { %v1249_v43 = vpop.f32.mrf.mxu1 }
 0x3ad   :  { %vm1261_vm0 = vcmp.gt.f32.partialorder %v1255_v39, 0.0  ;;  %v1265_v3 = vmul.f32 0.01, %v1255_v39  ;;  %v1250_v21 = vadd.f32 %v1249_v43, %v1154_v55  ;;  %v1266_v15 = vsel %vm1258_vm3, %v1240_v46, %v1262_v40 }
 0x3af   :  { %vm1260_vm1 = vcmp.gt.f32.partialorder %v1250_v21, 0.0  ;;  %v1264_v48 = vmul.f32 0.01, %v1250_v21  ;;  %v1269_v52 = vsel %vm1261_vm0, %v1255_v39, %v1265_v3 }
 0x3b0   :  { %1647 = vmatpush3.msra.mxu1 %v1269_v52 }
 0x3b1   :  { %1648 = vmatprep.subr.mxu1 %v1667_v19  ;;  %v1268_v0 = vsel %vm1260_vm1, %v1250_v21, %v1264_v48 }
 0x3b2   :  { %1649 = vmatpush3.msra.mxu1 %v1268_v0 }
 0x3b3   :  { %1650 = vmatprep.subr.mxu1 %v1667_v19 }
 0x3b4   :  { %1651 = vmatpush3.msra.mxu1 %v1267_v51 }
 0x3b5   :  { %1652 = vmatprep.subr.mxu1 %v1667_v19 }
 0x3b6   :  { %1653 = vmatpush3.msra.mxu1 %v1266_v15 }
 0x3b7   :  { %1655 = vmatmul.mubr.msk.f32.vlgmr.msra.gmra.mxu1 %vm801_vm6, %v1270_v37 }
 0x477   :  { %v1340_v11 = vpop.f32.mrf.mxu1 }
 0x478   :  { %v1354_v22 = vadd.f32 %v1353_v56, %v1340_v11 }
 0x479   :  { %v1656_v49 = vpop.f32.mrf.mxu1 }
 0x47a   :  { %v1355_v58 = vand.u32 2147483647, %v1354_v22  ;;  %vm1362_vm4 = vcmp.ge.f32.partialorder %v1354_v22, 0.0 }
 0x47c   :  { %v1356_v23 = vsub.f32 0.0, %v1355_v58 }
 0x47e   :  { %v1357_v24 = vmul.f32 1.442695, %v1356_v23 }
 0x480   :  { %1662 = vpow2.f32 %v1357_v24 }
 0x48d   :  { %v1663_v61 = vpop.eup %1662 }
 0x48e   :  { %v1359_v13 = vadd.f32 1.0, %v1663_v61 }
 0x490   :  { %1664 = vrcp.f32 %v1359_v13 }
 0x49d   :  { %v1665_v25 = vpop.eup %1664 }
 0x49e   :  { %v1363_v50 = vmul.f32 %v1665_v25, %v1663_v61 }
 0x4a0   :  { %v1364_v62 = vsel %vm1362_vm4, %v1665_v25, %v1363_v50 }
 0x4a1   :  { %1365 = vst [vmem:[%s2261_s11] sm:$0x1] %v1364_v62 }

</bundles_post_ra>
